<compile_context>
chip_gen: v7x
topology: tpu7x:2x2x1
jax: 0.10.0
libtpu: 0.0.40
codegen_flags: <defaults>
</compile_context>

<pallas_src>
import jax
import jax.numpy as jnp
import numpy as np
from jax.experimental import pallas as pl
from jax.experimental.pallas import tpu as pltpu


def _dft_cos_sin(n, n_cols):
    """cos/sin(2*pi*k*m/n); k*m reduced mod n in integers first (precision at large n)."""
    a = jnp.arange(n, dtype=jnp.int32)
    b = jnp.arange(n_cols, dtype=jnp.int32)
    km = (a[:, None] * b[None, :]) % n
    ang = (2.0 * np.pi / n) * km.astype(jnp.float32)
    return jnp.cos(ang), jnp.sin(ang)


def fourier_pool_kernel(x_ref, fw_ref, fh_ref, g_ref, y_ref):
    """Per-channel mean over (H,W) of |fft2(x)| via two stacked MXU matmuls."""
    _, ct, H, W = x_ref.shape
    Wh = fw_ref.shape[1] // 2            # rfft width = W//2 + 1

    # ---- stage 1: DFT along W (rfft columns). ONE matmul: [x@cos | -x@sin] ----
    x2 = x_ref[0].reshape(ct * H, W)                                     # (ct*H, W)
    t = jnp.dot(x2, fw_ref[...], preferred_element_type=jnp.float32)    # (ct*H, 2*Wh)
    tr = t[:, :Wh].reshape(ct, H, Wh)        # real part
    ti = t[:, Wh:].reshape(ct, H, Wh)        # imag part

    # ---- relayout once: H on the contraction axis, (c, l) lane-dense ----
    s = jnp.concatenate(
        [jnp.swapaxes(tr, 0, 1).reshape(H, ct * Wh),
         jnp.swapaxes(ti, 0, 1).reshape(H, ct * Wh)], axis=0)            # (2H, ct*Wh)

    # ---- stage 2: DFT along H. ONE matmul with [[ch, sh], [-sh, ch]] ----
    o = jnp.dot(fh_ref[...], s, preferred_element_type=jnp.float32)     # (2H, ct*Wh)
    re = o[:H, :]
    im = o[H:, :]
    mag = jnp.sqrt(re * re + im * im)                                    # (H, ct*Wh)

    # ---- global average pool: sublane reduce, then a tiny matmul whose block-diagonal
    #      weights fold the per-channel grouping, rfft column weights and 1/(H*W) ----
    colsum = jnp.sum(mag, axis=0, keepdims=True)                         # (1, ct*Wh)
    pooled = jnp.dot(colsum, g_ref[...],
                     preferred_element_type=jnp.float32)                 # (1, ct)
    y_ref[...] = pooled.reshape(1, 1, ct)


def ca_mlp_kernel(p_ref, w1t_ref, w2t_ref, y_ref):
    """1x1 conv -> GELU(erf) -> 1x1 conv -> sigmoid, batched over B in one shot."""
    h = jnp.dot(p_ref[...], w1t_ref[...], preferred_element_type=jnp.float32)
    h = 0.5 * h * (1.0 + jax.lax.erf(h * np.float32(1.0 / np.sqrt(2.0))))
    o = jnp.dot(h, w2t_ref[...], preferred_element_type=jnp.float32)
    y_ref[...] = jax.nn.sigmoid(o)


def fourier_pool(x, *, ct=None):
    """mean over (H, W) of |fft2(x)| for NCHW x.  Returns (B, C) float32."""
    B, C, H, W = x.shape
    if ct is None:
        ct = C                       # default: one channel tile (test-sized inputs)
    assert C % ct == 0, "channel tile must divide C"
    n_ct = C // ct
    Wh = W // 2 + 1

    # Stacked DFT matrices (rfft along W, full DFT along H).
    cw, sw = _dft_cos_sin(W, Wh)                        # (W, Wh)
    fw = jnp.concatenate([cw, -sw], axis=1)             # (W, 2*Wh)
    ch, sh = _dft_cos_sin(H, H)                         # (H, H)
    fh = jnp.concatenate(
        [jnp.concatenate([ch, sh], axis=1),
         jnp.concatenate([-sh, ch], axis=1)], axis=0)   # (2H, 2H)

    # Pool matrix: block-diagonal per channel, rfft column weights / (H*W) folded in.
    l = jnp.arange(Wh)
    colw = jnp.where((l == 0) | (2 * l == W), 1.0, 2.0).astype(jnp.float32) / (H * W)
    g = jnp.kron(jnp.eye(ct, dtype=jnp.float32), colw.reshape(Wh, 1))   # (ct*Wh, ct)

    pooled = pl.pallas_call(
        fourier_pool_kernel,
        out_shape=jax.ShapeDtypeStruct((B, 1, C), jnp.float32),
        grid_spec=pltpu.PrefetchScalarGridSpec(
            num_scalar_prefetch=0,
            grid=(B, n_ct),
            in_specs=[
                pl.BlockSpec((1, ct, H, W), lambda b, c: (b, c, 0, 0)),   # x tile
                pl.BlockSpec((W, 2 * Wh), lambda b, c: (0, 0)),           # stacked F_W
                pl.BlockSpec((2 * H, 2 * H), lambda b, c: (0, 0)),        # stacked F_H
                pl.BlockSpec((ct * Wh, ct), lambda b, c: (0, 0)),         # pool matrix
            ],
            out_specs=pl.BlockSpec((1, 1, ct), lambda b, c: (b, 0, c)),
        ),
        compiler_params=pltpu.CompilerParams(
            dimension_semantics=("parallel", "parallel")),
    )(x.astype(jnp.float32), fw, fh, g)
    return pooled.reshape(B, C)


def fourier_channel_attention(x, w1, w2, *, ct=None):
    """FCA forward: sigmoid(conv2(GELU(conv1(avgpool(|fft2(x)|))))). Output (B, C, 1, 1)."""
    B, C, H, W = x.shape
    pooled = fourier_pool(x, ct=ct)                                       # (B, C)
    y = pl.pallas_call(
        ca_mlp_kernel,
        out_shape=jax.ShapeDtypeStruct((B, C), jnp.float32),
    )(pooled, w1.T.astype(jnp.float32), w2.T.astype(jnp.float32))
    return y.reshape(B, C, 1, 1)


if __name__ == "__main__":
    B, C, H, W = 2, 8, 16, 16
    reduction = 4
    Cr = C // reduction

    key = jax.random.PRNGKey(0)
    kx, k1, k2 = jax.random.split(key, 3)
    x = jax.random.normal(kx, (B, C, H, W), jnp.float32)

    # Deterministic init of the 1x1 conv weights (no bias), kaiming-uniform-like.
    b1 = 1.0 / np.sqrt(C)
    w1 = jax.random.uniform(k1, (Cr, C), jnp.float32, -b1, b1)   # conv1 weight (out=Cr, in=C)
    b2 = 1.0 / np.sqrt(Cr)
    w2 = jax.random.uniform(k2, (C, Cr), jnp.float32, -b2, b2)   # conv2 weight (out=C, in=Cr)

    pooled = jax.block_until_ready(fourier_pool(x))
    y = jax.block_until_ready(fourier_channel_attention(x, w1, w2))

    # Pure-JAX reference (uses the real FFT op).
    fft_feat = jnp.abs(jnp.fft.fft2(x, axes=(-2, -1)))
    pooled_ref = jnp.mean(fft_feat, axis=(-2, -1))               # (B, C)
    h = pooled_ref @ w1.T
    h = 0.5 * h * (1.0 + jax.lax.erf(h / jnp.sqrt(2.0)))
    ref = jax.nn.sigmoid(h @ w2.T).reshape(B, C, 1, 1)

    np.testing.assert_allclose(np.asarray(pooled), np.asarray(pooled_ref),
                               rtol=1e-3, atol=1e-3)
    np.testing.assert_allclose(np.asarray(y), np.asarray(ref), rtol=1e-3, atol=1e-4)
    print("KERNEL_OK")
</pallas_src>

<mosaic_0001>
module attributes {stable_mosaic.version = 11 : i64} {
  func.func @fourier_pool_kernel(%arg0: i32, %arg1: i32, %arg2: memref<1x8x16x16xf32, #tpu.memory_space<vmem>>, %arg3: memref<16x18xf32, #tpu.memory_space<vmem>>, %arg4: memref<32x32xf32, #tpu.memory_space<vmem>>, %arg5: memref<72x8xf32, #tpu.memory_space<vmem>>, %arg6: memref<1x1x8xf32, #tpu.memory_space<vmem>>) attributes {dimension_semantics = [#tpu.dimension_semantics<parallel>, #tpu.dimension_semantics<parallel>], iteration_bounds = array<i64: 2, 1>, scalar_prefetch = 0 : i64, scratch_operands = 0 : i64, tpu.core_type = #tpu.core_type<tc>, window_params = [{transform_indices = @transform_0, window_bounds = array<i64: 1, 8, 16, 16>}, {pipeline_mode = #tpu.pipeline_mode<synchronous>, transform_indices = @transform_1, window_bounds = array<i64: 16, 18>}, {pipeline_mode = #tpu.pipeline_mode<synchronous>, transform_indices = @transform_2, window_bounds = array<i64: 32, 32>}, {pipeline_mode = #tpu.pipeline_mode<synchronous>, transform_indices = @transform_3, window_bounds = array<i64: 72, 8>}, {transform_indices = @transform_4, window_bounds = array<i64: 1, 1, 8>}]} {
    %c0 = arith.constant 0 : index
    %c0_0 = arith.constant 0 : index
    %c0_1 = arith.constant 0 : index
    %c0_2 = arith.constant 0 : index
    %0 = vector.load %arg2[%c0, %c0_0, %c0_1, %c0_2] : memref<1x8x16x16xf32, #tpu.memory_space<vmem>>, vector<1x8x16x16xf32>
    %1 = vector.shape_cast %0 : vector<1x8x16x16xf32> to vector<8x16x16xf32>
    %2 = vector.shape_cast %1 : vector<8x16x16xf32> to vector<128x16xf32>
    %c0_3 = arith.constant 0 : index
    %c0_4 = arith.constant 0 : index
    %3 = vector.load %arg3[%c0_3, %c0_4] : memref<16x18xf32, #tpu.memory_space<vmem>>, vector<16x18xf32>
    %cst = arith.constant dense<0.000000e+00> : vector<128x18xf32>
    %4 = tpu.matmul %2, %3, %cst {dimension_numbers = #tpu.dot_dimension_numbers<[1], [0], [0], [1], [0, 0, 1, 1], [], []>} : vector<128x16xf32>, vector<16x18xf32>, vector<128x18xf32> -> vector<128x18xf32>
    %5 = vector.extract_strided_slice %4 {offsets = [0, 0], sizes = [128, 9], strides = [1, 1]} : vector<128x18xf32> to vector<128x9xf32>
    %6 = vector.shape_cast %5 : vector<128x9xf32> to vector<8x16x9xf32>
    %7 = vector.extract_strided_slice %4 {offsets = [0, 9], sizes = [128, 9], strides = [1, 1]} : vector<128x18xf32> to vector<128x9xf32>
    %8 = vector.shape_cast %7 : vector<128x9xf32> to vector<8x16x9xf32>
    %9 = tpu.transpose %6, [1, 0, 2] : vector<8x16x9xf32> -> vector<16x8x9xf32>
    %10 = vector.shape_cast %9 : vector<16x8x9xf32> to vector<16x72xf32>
    %11 = tpu.transpose %8, [1, 0, 2] : vector<8x16x9xf32> -> vector<16x8x9xf32>
    %12 = vector.shape_cast %11 : vector<16x8x9xf32> to vector<16x72xf32>
    %13 = tpu.concatenate %10, %12 in 0 : vector<16x72xf32>, vector<16x72xf32> -> vector<32x72xf32>
    %c0_5 = arith.constant 0 : index
    %c0_6 = arith.constant 0 : index
    %14 = vector.load %arg4[%c0_5, %c0_6] : memref<32x32xf32, #tpu.memory_space<vmem>>, vector<32x32xf32>
    %cst_7 = arith.constant dense<0.000000e+00> : vector<32x72xf32>
    %15 = tpu.matmul %14, %13, %cst_7 {dimension_numbers = #tpu.dot_dimension_numbers<[1], [0], [0], [1], [0, 0, 1, 1], [], []>} : vector<32x32xf32>, vector<32x72xf32>, vector<32x72xf32> -> vector<32x72xf32>
    %16 = vector.extract_strided_slice %15 {offsets = [0, 0], sizes = [16, 72], strides = [1, 1]} : vector<32x72xf32> to vector<16x72xf32>
    %17 = vector.extract_strided_slice %15 {offsets = [16, 0], sizes = [16, 72], strides = [1, 1]} : vector<32x72xf32> to vector<16x72xf32>
    %18 = arith.mulf %16, %16 : vector<16x72xf32>
    %19 = arith.mulf %17, %17 : vector<16x72xf32>
    %20 = arith.addf %18, %19 : vector<16x72xf32>
    %21 = math.sqrt %20 : vector<16x72xf32>
    %cst_8 = arith.constant dense<0.000000e+00> : vector<72xf32>
    %22 = vector.multi_reduction <add>, %21, %cst_8 [0] : vector<16x72xf32> to vector<72xf32>
    %23 = vector.shape_cast %22 : vector<72xf32> to vector<1x72xf32>
    %c0_9 = arith.constant 0 : index
    %c0_10 = arith.constant 0 : index
    %24 = vector.load %arg5[%c0_9, %c0_10] : memref<72x8xf32, #tpu.memory_space<vmem>>, vector<72x8xf32>
    %cst_11 = arith.constant dense<0.000000e+00> : vector<1x8xf32>
    %25 = tpu.matmul %23, %24, %cst_11 {dimension_numbers = #tpu.dot_dimension_numbers<[1], [0], [0], [1], [0, 0, 1, 1], [], []>} : vector<1x72xf32>, vector<72x8xf32>, vector<1x8xf32> -> vector<1x8xf32>
    %26 = vector.shape_cast %25 : vector<1x8xf32> to vector<1x1x8xf32>
    %c0_12 = arith.constant 0 : index
    %c0_13 = arith.constant 0 : index
    %c0_14 = arith.constant 0 : index
    %27 = vector.load %arg6[%c0_12, %c0_13, %c0_14] : memref<1x1x8xf32, #tpu.memory_space<vmem>>, vector<1x1x8xf32>
    tpu.vector_store %arg6[%c0_12, %c0_13, %c0_14], %26 {strides = array<i32>} : memref<1x1x8xf32, #tpu.memory_space<vmem>>, vector<1x1x8xf32>,
    return
  }
  func.func @transform_0(%arg0: i32, %arg1: i32) -> (i32, i32, i32, i32) {
    %c0_i32 = arith.constant 0 : i32
    %c0_i32_0 = arith.constant 0 : i32
    %c0_i32_1 = arith.constant 0 : i32
    return %arg0, %arg1, %c0_i32, %c0_i32_0 : i32, i32, i32, i32
  }
  func.func @transform_1(%arg0: i32, %arg1: i32) -> (i32, i32) {
    %c0_i32 = arith.constant 0 : i32
    %c0_i32_0 = arith.constant 0 : i32
    %c0_i32_1 = arith.constant 0 : i32
    return %c0_i32, %c0_i32_0 : i32, i32
  }
  func.func @transform_2(%arg0: i32, %arg1: i32) -> (i32, i32) {
    %c0_i32 = arith.constant 0 : i32
    %c0_i32_0 = arith.constant 0 : i32
    %c0_i32_1 = arith.constant 0 : i32
    return %c0_i32, %c0_i32_0 : i32, i32
  }
  func.func @transform_3(%arg0: i32, %arg1: i32) -> (i32, i32) {
    %c0_i32 = arith.constant 0 : i32
    %c0_i32_0 = arith.constant 0 : i32
    %c0_i32_1 = arith.constant 0 : i32
    return %c0_i32, %c0_i32_0 : i32, i32
  }
  func.func @transform_4(%arg0: i32, %arg1: i32) -> (i32, i32, i32) {
    %c0_i32 = arith.constant 0 : i32
    %c0_i32_0 = arith.constant 0 : i32
    return %arg0, %c0_i32, %arg1 : i32, i32, i32
  }
}

</mosaic_0001>

<bundles_post_ra>
// kernel: tpu_custom_call.1
= control target key start
LH: loop header
LB: loop body
LE: loop exit
PB: predicated region body
PF: predicated region fallthrough
CT: control target
= control target key end

     0   :  { %9 = vsyncpa [#allocation3], 0  ;;  %s3112_s0 = inlined_call_operand.hbm [shape: f32[2,8,16,16], index: 0, kind: input, shape index: {}]   ;;  %s3113_s1 = inlined_call_operand.vmem [shape: f32[16,18], index: 1, kind: input, shape index: {}]   ;;  %s3114_s2 = inlined_call_operand.vmem [shape: f32[32,32], index: 2, kind: input, shape index: {}]   ;;  %s3115_s3 = inlined_call_operand.vmem [shape: f32[72,8], index: 3, kind: input, shape index: {}]   ;;  %s3116_s4 = inlined_call_operand.hbm [shape: f32[2,1,8], index: 4, kind: output, shape index: {}]  }
   0x1   :  { %11 = vsyncpa [#allocation3 + $0x1], 0 }
   0x2   :  { %12 = vsyncpa [#allocation4], 0 }
   0x3   :  { %14 = vsyncpa [#allocation4 + $0x1], 0  ;;  %s2550_s15 = smov 0   ;;  %s2552_s16 = smov 0  }
   0x4   :  { %s2554_s17 = smov 0   ;;  %s2556_s18 = smov 0  }
   0x5   :  { %s2558_s19 = smov 0   ;;  %s2560_s20 = smov 0  }
   0x6 LB: > { %s2054_s21 = sadd.s32 4294967295, %s2506_s20   ;;  %s2055_s22 = sadd.s32 4294967294, %s2506_s20   ;;  %s2506_s20 = sphi %s2560_s20, %s20_s20   ;;  %s2502_s19 = sphi %s2558_s19, %s3131_s19   ;;  %s2498_s18 = sphi %s2556_s18, %s3130_s18   ;;  %s2494_s17 = sphi %s2554_s17, %s3129_s17   ;;  %s2490_s16 = sphi %s2552_s16, %s3128_s16   ;;  %s2486_s15 = sphi %s2550_s15, %s3127_s15  }
   0x7   : > { %s32_s23 = sadd.s32 1, %s2502_s19  ;;  %s41_s24 = sadd.s32 1, %s2494_s17 }
   0x8   : > { %p34_p0 = scmp.ge.s32.totalorder %s32_s23, 2  ;;  %p48_p1 = scmp.ne.s32.totalorder %s2494_s17, %s2490_s16 }
   0x9   : > { %p49_p2 = scmp.eq.s32.totalorder %s2506_s20, 0  ;;  %p54_p3 = scmp.ne.s32.totalorder %s2490_s16, %s2486_s15 }
   0xa   : > { %s3133_s23 = smov (%p34_p0, %s32_s23), 0  ;;  %p55_p5 = scmp.eq.s32.totalorder %s2054_s21, 0 }
   0xb   : > { %p2591_p4 = por %p49_p2, %p48_p1  ;;  %s36_s26 = ssub.s32 %s2502_s19, %s3133_s23 }
   0xc   : > { %p143_p6 = scmp.eq.s32.totalorder %s2054_s21, 1  ;;  %p39_p7 = scmp.eq.s32.totalorder %s36_s26, 0 }
   0xd   : > { %p2597_p8 = por %p55_p5, %p54_p3  ;;  %p149_p10 = scmp.eq.s32.totalorder %s2055_s22, 1 }
   0xe   : > { %p2601_p9 = por %p143_p6, %p48_p1  ;;  %p2255_p13 = scmp.lt.s32.totalorder %s2506_s20, 2 }
   0xf   : > { %s2606_s29 = scalar_select %p39_p7, %s2494_s17, %s41_s24  }
  0x10   : > { %s3120_s28 = scalar_select %p2601_p9, 1, 0 }
  0x11   : > { %p2608_p11 = por %p149_p10, %p54_p3  ;;  %s178_s5 = sand.u32 1, %s2494_s17  }
  0x12   : > { %s2058_s6 = sshll.u32 %s178_s5, 7  ;;  %s2119_s7 = sshll.u32 %s2502_s19, 11 }
  0x13   : > { %s3121_s30 = scalar_select %p2608_p11, 1, 0 }
  0x14   : > { %s2619_s10 = scalar_lea.hbm %s3112_s0, %s2119_s7  ;;  %s182_s11 = scalar_lea.vmem [#allocation2], %s2058_s6 }
  0x15   : > { %s192_s12 = sshll.u32 %s182_s11, 4  ;;  %p2625_p0 = pnand %p2255_p13, %p2591_p4  ;;  %s2621_s12 = int_to_ptr.vmem [resolvable:$true] %s192_s12 }
  0x16   : > { %s2630_s14 = scalar_lea.sflag [#allocation3], %s178_s5  ;;  %s2394_s21 = scalar_lea.hbm %s2619_s10, 2048 }
  0x17   : > { %p2395_p2 = scmp.ne.s32.totalorder %s2619_s10, %s2394_s21  ;;  %p2396_p3 = pneg %p2625_p0 }
  0x18   : > { %s2399_s25 = scalar_lea.hbm %s3112_s0, 4096  ;;  %p2400_p4 = scmp.lt.u32.totalorder %s2619_s10, %s3112_s0 }
  0x19   : > { %p2397_p5 = pnand %p2396_p3, %p2395_p2  ;;  %p2401_p7 = scmp.lt.u32.totalorder %s2399_s25, %s2394_s21 }
  0x1a   : > { %p2403_p13 = scmp.lt.u32.totalorder %s2394_s21, %s2619_s10 }
  0x1b   : > { %p2398_p6 = pneg %p2397_p5  ;;  %p2402_p10 = por %p2401_p7, %p2400_p4 }
  0x1d   : > { %p2404_p12 = por %p2403_p13, %p2402_p10 }
  0x1f   : > { %p2405_p1 = pnand %p2404_p12, %p2398_p6 }
  0x21   : > { %2408 = shalt.err (!%p2405_p1)
}
  0x22   : > { %s2409_s5 = scalar_lea.vmem %s2621_s12, 2048  ;;  %s2508_s7 = smov [#allocation2]  }
  0x23   : > { %p2410_p2 = scmp.ne.s32.totalorder %s2621_s12, %s2409_s5  ;;  %s2414_s8 = sshll.u32 %s2508_s7, 4  ;;  %s2415_s8 = int_to_ptr.vmem [resolvable:$false] %s2414_s8 }
  0x24   : > { %s2416_s9 = scalar_lea.vmem %s2415_s8, 4096  ;;  %p2417_p9 = scmp.lt.s32.totalorder %s2621_s12, %s2415_s8 }
  0x25   : > { %p2412_p5 = pnand %p2410_p2, %p2396_p3  ;;  %p2418_p4 = scmp.lt.s32.totalorder %s2416_s9, %s2409_s5 }
  0x27   : > { %p2413_p11 = pneg %p2412_p5  ;;  %p2419_p7 = por %p2418_p4, %p2417_p9 }
  0x29   : > { %p2420_p10 = pnand %p2419_p7, %p2413_p11 }
  0x2b   : > { %2423 = shalt.err (!%p2420_p10)
}
  0x2c   : > { %s2509_s11 = smov 128   ;;  %s2510_s21 = smov 8  }
  0x2d   : > { %2250 = dma.hbm_to_vmem [thread:$0]  (!%p2625_p0), %s2619_s10, 2048, %s2621_s12, %s2630_s14, %s2509_s11, %s2509_s11, %s2510_s21  }
  0x2e   : > { %p200_p12 = scmp.lt.s32.totalorder %s2506_s20, 3  ;;  %p3123_p1 = scmp.ge.s32.totalorder %s2506_s20, 1 }
  0x30   : > { %p201_p3 = pnand %p3123_p1, %p200_p12 }
  0x31   : > { %s2662_s22 = sand.u32 (!%p201_p3), 1, %s2490_s16  }
  0x32   : > { %204 = sbr.rel (%p201_p3) target bundleno = 1056 (0x420), region = 36  ;;  %s2062_s24 = sshll.u32 (!%p201_p3), %s2662_s22, 7 }
  0x33   : > { %s207_s25 = scalar_lea.sflag (!%p201_p3), [#allocation3], %s2662_s22  ;;  %s2666_s26 = scalar_lea.vmem (!%p201_p3), [#allocation2], %s2062_s24 }
  0x39   : > { %2477 = dma.done.wait (%p2597_p8), %s207_s25, 2048  }
  0x3a   : > { %2479 = vsyncadd (%p2597_p8), %s207_s25, 4294965248  ;;  %vm253_vm0 = vcmask 130048   ;;  %v251_v0 = vld [vmem:[%s3113_s1] sm:$0xff]  ;;  %v252_v1 = vld [vmem:[%s3113_s1 + $0x8] sm:$0xff]  ;;  %s2511_s27 = smov 119   ;;  %v452_v23 = vlaneseq  ;;  %s2514_s6 = smov 9  }
  0x3b   : > { %v235_v2 = vld [vmem:[%s2666_s26] sm:$0xff]  ;;  %v2219_v3 = vpack.c.bf16 %v252_v1, %v251_v0  ;;  %v236_v4 = vld [vmem:[%s2666_s26 + $0x8] sm:$0xff]  ;;  %v237_v5 = vld [vmem:[%s2666_s26 + $0x10] sm:$0xff]  ;;  %v2512_v21 = vmov 1983009808   ;;  %s2515_s5 = smov 18  }
  0x3c   : > { %2160 = vmatprep.mubr.msk.f32.mxu0 %vm253_vm0, %v235_v2  ;;  %v238_v6 = vld [vmem:[%s2666_s26 + $0x18] sm:$0xff]  ;;  %v239_v7 = vld [vmem:[%s2666_s26 + $0x20] sm:$0xff]  ;;  %v240_v8 = vld [vmem:[%s2666_s26 + $0x28] sm:$0xff]  ;;  %v450_v22 = vunpack.c.l.s4 %v2512_v21  ;;  %v2513_v26 = vmov 1934713408   ;;  %v453_v29 = vshrl.u32 %v452_v23, 7 }
  0x3d   : > { %2220 = vmatprep.subr.bf16.mxu0 %v2219_v3  ;;  %v241_v9 = vld [vmem:[%s2666_s26 + $0x30] sm:$0xff]  ;;  %v242_v10 = vld [vmem:[%s2666_s26 + $0x38] sm:$0xff]  ;;  %v243_v11 = vld [vmem:[%s2666_s26 + $0x40] sm:$0xff]  ;;  %v514_v27 = vunpack.c.l.s4 %v2513_v26  ;;  %s2516_s7 = smov 27   ;;  %s2517_s8 = smov 45   ;;  %vm1047_vm1 = vcmask 72704  }
  0x3e   : > { %2222 = vmatpush3.bf16.msra.mxu0 %v2219_v3  ;;  %v244_v12 = vld [vmem:[%s2666_s26 + $0x48] sm:$0xff]  ;;  %v245_v13 = vld [vmem:[%s2666_s26 + $0x50] sm:$0xff]  ;;  %v246_v14 = vld [vmem:[%s2666_s26 + $0x58] sm:$0xff]  ;;  %v451_v28 = vunpack.c.0.s8 %v450_v22  ;;  %s2518_s9 = smov 36   ;;  %s2519_s11 = smov 54   ;;  %vm1050_vm2 = vcmask 146432  }
  0x3f   : > { %v247_v15 = vld [vmem:[%s2666_s26 + $0x60] sm:$0xff]  ;;  %v248_v16 = vld [vmem:[%s2666_s26 + $0x68] sm:$0xff]  ;;  %v249_v17 = vld [vmem:[%s2666_s26 + $0x70] sm:$0xff]  ;;  %v515_v36 = vunpack.c.0.s8 %v514_v27  ;;  %s2520_s21 = smov 63   ;;  %vm1053_vm3 = vcmask 220160   ;;  %vm1056_vm4 = vcmask 293888  }
  0x40   : > { %v250_v18 = vld [vmem:[%s2666_s26 + $0x78] sm:$0xff]  ;;  %v2715_v37 = vsub.s32 %v451_v28, %v453_v29  ;;  %vm1059_vm5 = vcmask 367616   ;;  %vm1750_vm6 = vcmask 261120   ;;  %vm1062_vm7 = vcmask 441344   ;;  %s1963_s26 = scalar_lea.sflag [#allocation4], %s2662_s22  ;;  %p3124_p9 = scmp.ne.s32.totalorder %s3120_s28, 0 }
  0x41   : > { %2161 = vmatmul.mubr.msk.f32.vlgmr.msra.gmra.mrb[0].mxu0 %vm253_vm0, %v236_v4  ;;  %v2718_v42 = vsub.s32 %v515_v36, %v453_v29  ;;  %vm1065_vm8 = vcmask 515072   ;;  %vm2522_vm9 = vmmov 0   ;;  %vm1868_vm11 = vcmask 588800  }
  0x42   : > { %2163 = vmatprep.mubr.msk.f32.mxu0 %vm253_vm0, %v237_v5  ;;  %vm1960_vm15 = vcmask 57344  }
  0x45   : > { %2164 = vmatmul.mubr.msk.f32.gmra.mrb[2].mxu0 %vm253_vm0, %v238_v6 }
  0x46   : > { %2166 = vmatprep.mubr.msk.f32.mxu0 %vm253_vm0, %v239_v7 }
  0x49   : > { %2167 = vmatmul.mubr.msk.f32.gmra.mrb[4].mxu0 %vm253_vm0, %v240_v8 }
  0x4a   : > { %2169 = vmatprep.mubr.msk.f32.mxu0 %vm253_vm0, %v241_v9 }
  0x4d   : > { %2170 = vmatmul.mubr.msk.f32.gmra.mrb[6].mxu0 %vm253_vm0, %v242_v10 }
  0x4e   : > { %2172 = vmatprep.mubr.msk.f32.mxu0 %vm253_vm0, %v243_v11 }
  0x51   : > { %2173 = vmatmul.mubr.msk.f32.gmra.mrb[8].mxu0 %vm253_vm0, %v244_v12 }
  0x52   : > { %2175 = vmatprep.mubr.msk.f32.mxu0 %vm253_vm0, %v245_v13 }
  0x55   : > { %2176 = vmatmul.mubr.msk.f32.gmra.mrb[10].mxu0 %vm253_vm0, %v246_v14 }
  0x56   : > { %2178 = vmatprep.mubr.msk.f32.mxu0 %vm253_vm0, %v247_v15 }
  0x59   : > { %2179 = vmatmul.mubr.msk.f32.gmra.mrb[12].mxu0 %vm253_vm0, %v248_v16 }
  0x5a   : > { %2181 = vmatprep.mubr.msk.f32.mxu0 %vm253_vm0, %v249_v17 }
  0x5d   : > { %2182 = vmatmul.mubr.msk.f32.gmra.mrb[14].mxu0 %vm253_vm0, %v250_v18 }
 0x114   : > { %v2162_v19 = vpop.f32.mrb[0].mxu0 }
 0x115   : > { %1086 = vrot.lane.b32.xlu0 %v2162_v19, %s2511_s27  ;;  %v368_v20 = vpop.f32.mrb[1].mxu0 }
 0x118   : > { %v2165_v24 = vpop.f32.mrb[2].mxu0 }
 0x119   : > { %1084 = vrot.lane.b32.xlu0 %v368_v20, %s2511_s27  ;;  %1090 = vrot.lane.b32.xlu1 %v2165_v24, %s2511_s27  ;;  %v378_v25 = vpop.f32.mrb[3].mxu0 }
 0x11c   : > { %v2168_v30 = vpop.f32.mrb[4].mxu0 }
 0x11d   : > { %v583_v31 = vcombine.low %v2162_v19, %v2168_v30  ;;  %v584_v32 = vcombine.high %v2162_v19, %v2168_v30  ;;  %1088 = vrot.lane.b32.xlu1 %v378_v25, %s2511_s27  ;;  %v388_v33 = vpop.f32.mrb[5].mxu0 }
 0x11e   : > { %v447_v34 = vcombine.low %v368_v20, %v388_v33  ;;  %v448_v35 = vcombine.high %v368_v20, %v388_v33  ;;  %1092 = vrot.lane.b32.xlu0 %v388_v33, %s2511_s27 }
 0x11f   : > { %v591_v45 = vrot.slane %v583_v31, %v2715_v37  ;;  %v598_v46 = vrot.slane %v584_v32, %v2715_v37 }
 0x120   : > { %v2171_v38 = vpop.f32.mrb[6].mxu0  ;;  %v455_v49 = vrot.slane %v447_v34, %v2715_v37  ;;  %v462_v50 = vrot.slane %v448_v35, %v2715_v37 }
 0x121   : > { %v599_v39 = vcombine.low %v2165_v24, %v2171_v38  ;;  %v600_v40 = vcombine.high %v2165_v24, %v2171_v38  ;;  %1094 = vrot.lane.b32.xlu1 %v2168_v30, %s2511_s27  ;;  %v398_v41 = vpop.f32.mrb[7].mxu0 }
 0x122   : > { %v463_v43 = vcombine.low %v378_v25, %v398_v41  ;;  %v464_v44 = vcombine.high %v378_v25, %v398_v41  ;;  %1096 = vrot.lane.b32.xlu0 %v398_v41, %s2511_s27 }
 0x123   : > { %v607_v47 = vrot.slane %v599_v39, %v2715_v37  ;;  %v614_v48 = vrot.slane %v600_v40, %v2715_v37 }
 0x124   : > { %v471_v51 = vrot.slane %v463_v43, %v2715_v37  ;;  %v478_v52 = vrot.slane %v464_v44, %v2715_v37  ;;  %v2174_v53 = vpop.f32.mrb[8].mxu0 }
 0x125   : > { %v647_v54 = vcombine.low %v591_v45, %v607_v47  ;;  %v648_v55 = vcombine.high %v591_v45, %v607_v47  ;;  %v663_v56 = vcombine.low %v598_v46, %v614_v48  ;;  %v664_v57 = vcombine.high %v598_v46, %v614_v48  ;;  %1098 = vrot.lane.b32.xlu1 %v2171_v38, %s2511_s27  ;;  %v408_v58 = vpop.f32.mrb[9].mxu0 }
 0x126   : > { %v511_v59 = vcombine.low %v455_v49, %v471_v51  ;;  %v512_v60 = vcombine.high %v455_v49, %v471_v51  ;;  %v527_v61 = vcombine.low %v462_v50, %v478_v52  ;;  %v528_v62 = vcombine.high %v462_v50, %v478_v52  ;;  %1100 = vrot.lane.b32.xlu0 %v408_v58, %s2511_s27 }
 0x127   : > { %v655_v63 = vrot.slane %v647_v54, %v2718_v42  ;;  %v662_v0 = vrot.slane %v648_v55, %v2718_v42  ;;  %v671_v1 = vrot.slane %v663_v56, %v2718_v42  ;;  %v678_v2 = vrot.slane %v664_v57, %v2718_v42 }
 0x128   : > { %v519_v3 = vrot.slane %v511_v59, %v2718_v42  ;;  %v526_v4 = vrot.slane %v512_v60, %v2718_v42  ;;  %v535_v5 = vrot.slane %v527_v61, %v2718_v42  ;;  %v542_v6 = vrot.slane %v528_v62, %v2718_v42  ;;  %v2177_v7 = vpop.f32.mrb[10].mxu0 }
 0x129   : > { %v2087_v8 = vcombine.low %v655_v63, %v662_v0  ;;  %v2089_v9 = vcombine.high %v655_v63, %v662_v0  ;;  %v2091_v10 = vcombine.low %v671_v1, %v678_v2  ;;  %v2093_v11 = vcombine.high %v671_v1, %v678_v2  ;;  %1102 = vrot.lane.b32.xlu1 %v2174_v53, %s2511_s27  ;;  %v418_v12 = vpop.f32.mrb[11].mxu0 }
 0x12a   : > { %v2079_v13 = vcombine.low %v519_v3, %v526_v4  ;;  %v2081_v14 = vcombine.high %v519_v3, %v526_v4  ;;  %v2083_v15 = vcombine.low %v535_v5, %v542_v6  ;;  %v2085_v16 = vcombine.high %v535_v5, %v542_v6  ;;  %1104 = vrot.lane.b32.xlu0 %v418_v12, %s2511_s27 }
 0x12b   : > { %v2742_v17 = vrot.slane %v2087_v8, %v2715_v37  ;;  %v2745_v18 = vrot.slane %v2089_v9, %v2715_v37  ;;  %v2748_v19 = vrot.slane %v2091_v10, %v2715_v37  ;;  %v2751_v20 = vrot.slane %v2093_v11, %v2715_v37 }
 0x12c   : > { %v2180_v21 = vpop.f32.mrb[12].mxu0  ;;  %v2754_v22 = vrot.slane %v2079_v13, %v2715_v37  ;;  %v2757_v23 = vrot.slane %v2081_v14, %v2715_v37  ;;  %v2760_v24 = vrot.slane %v2083_v15, %v2715_v37  ;;  %v2763_v25 = vrot.slane %v2085_v16, %v2715_v37 }
 0x12d   : > { %v615_v26 = vcombine.low %v2174_v53, %v2180_v21  ;;  %v616_v27 = vcombine.high %v2174_v53, %v2180_v21  ;;  %1106 = vrot.lane.b32.xlu1 %v2177_v7, %s2511_s27  ;;  %v428_v28 = vpop.f32.mrb[13].mxu0  ;;  %v919_v29 = vcombine.low %v2742_v17, %v2745_v18  ;;  %v951_v30 = vcombine.low %v2748_v19, %v2751_v20 }
 0x12e   : > { %v479_v31 = vcombine.low %v408_v58, %v428_v28  ;;  %v480_v32 = vcombine.high %v408_v58, %v428_v28  ;;  %1108 = vrot.lane.b32.xlu0 %v428_v28, %s2511_s27  ;;  %v783_v33 = vcombine.low %v2754_v22, %v2757_v23  ;;  %v815_v34 = vcombine.low %v2760_v24, %v2763_v25 }
 0x12f   : > { %v623_v35 = vrot.slane %v615_v26, %v2715_v37  ;;  %v630_v36 = vrot.slane %v616_v27, %v2715_v37  ;;  %v2778_v38 = vrot.slane %v919_v29, %v2718_v42  ;;  %v2781_v39 = vrot.slane %v951_v30, %v2718_v42 }
 0x130   : > { %v487_v40 = vrot.slane %v479_v31, %v2715_v37  ;;  %v494_v41 = vrot.slane %v480_v32, %v2715_v37  ;;  %v2183_v43 = vpop.f32.mrb[14].mxu0  ;;  %v2786_v44 = vrot.slane %v783_v33, %v2718_v42  ;;  %v2789_v45 = vrot.slane %v815_v34, %v2718_v42 }
 0x131   : > { %v631_v46 = vcombine.low %v2177_v7, %v2183_v43  ;;  %v632_v47 = vcombine.high %v2177_v7, %v2183_v43  ;;  %1110 = vrot.lane.b32.xlu1 %v2180_v21, %s2511_s27  ;;  %v438_v48 = vpop.f32.mrb[15].mxu0  ;;  %v983_v49 = vcombine.low %v2778_v38, %v2781_v39  ;;  %v984_v50 = vcombine.high %v2778_v38, %v2781_v39 }
 0x132   : > { %v495_v51 = vcombine.low %v418_v12, %v438_v48  ;;  %v496_v52 = vcombine.high %v418_v12, %v438_v48  ;;  %1112 = vrot.lane.b32.xlu0 %v438_v48, %s2511_s27  ;;  %v848_v53 = vcombine.high %v2786_v44, %v2789_v45  ;;  %v847_v54 = vcombine.low %v2786_v44, %v2789_v45 }
 0x133   : > { %v639_v55 = vrot.slane %v631_v46, %v2715_v37  ;;  %v646_v56 = vrot.slane %v632_v47, %v2715_v37  ;;  %v784_v57 = vcombine.high %v2754_v22, %v2757_v23  ;;  %v816_v58 = vcombine.high %v2760_v24, %v2763_v25 }
 0x134   : > { %v503_v59 = vrot.slane %v495_v51, %v2715_v37  ;;  %v510_v60 = vrot.slane %v496_v52, %v2715_v37  ;;  %v2320_v61 = vpack.i.bf16 %v984_v50, %v848_v53  ;;  %v920_v62 = vcombine.high %v2742_v17, %v2745_v18 }
 0x135   : > { %v679_v63 = vcombine.low %v623_v35, %v639_v55  ;;  %v680_v0 = vcombine.high %v623_v35, %v639_v55  ;;  %v695_v1 = vcombine.low %v630_v36, %v646_v56  ;;  %v696_v2 = vcombine.high %v630_v36, %v646_v56  ;;  %1114 = vrot.lane.b32.xlu1 %v2183_v43, %s2511_s27 }
 0x136   : > { %v543_v3 = vcombine.low %v487_v40, %v503_v59  ;;  %v544_v4 = vcombine.high %v487_v40, %v503_v59  ;;  %v559_v5 = vcombine.low %v494_v41, %v510_v60  ;;  %v560_v6 = vcombine.high %v494_v41, %v510_v60  ;;  %2321 = vrot.lane.b32.xlu0 %v2320_v61, %s2514_s6 }
 0x137   : > { %v687_v7 = vrot.slane %v679_v63, %v2718_v42  ;;  %v694_v8 = vrot.slane %v680_v0, %v2718_v42  ;;  %v703_v9 = vrot.slane %v695_v1, %v2718_v42  ;;  %v710_v10 = vrot.slane %v696_v2, %v2718_v42 }
 0x138   : > { %v551_v11 = vrot.slane %v543_v3, %v2718_v42  ;;  %v558_v12 = vrot.slane %v544_v4, %v2718_v42  ;;  %v567_v13 = vrot.slane %v559_v5, %v2718_v42  ;;  %v574_v14 = vrot.slane %v560_v6, %v2718_v42 }
 0x139   : > { %v2088_v15 = vcombine.low %v687_v7, %v694_v8  ;;  %v2090_v16 = vcombine.high %v687_v7, %v694_v8  ;;  %v2092_v17 = vcombine.low %v703_v9, %v710_v10  ;;  %v2094_v18 = vcombine.high %v703_v9, %v710_v10 }
 0x13a   : > { %v2080_v21 = vcombine.low %v551_v11, %v558_v12  ;;  %v2082_v22 = vcombine.high %v551_v11, %v558_v12  ;;  %v2084_v23 = vcombine.low %v567_v13, %v574_v14  ;;  %v2086_v24 = vcombine.high %v567_v13, %v574_v14 }
 0x13b   : > { %v798_v25 = vrot.slane %v784_v57, %v2718_v42  ;;  %v830_v26 = vrot.slane %v816_v58, %v2718_v42  ;;  %v934_v27 = vrot.slane %v920_v62, %v2718_v42  ;;  %v952_v28 = vcombine.high %v2748_v19, %v2751_v20 }
 0x13c   : > { %v734_v29 = vrot.slane %v2080_v21, %v2715_v37  ;;  %v750_v30 = vrot.slane %v2082_v22, %v2715_v37  ;;  %v766_v31 = vrot.slane %v2084_v23, %v2715_v37  ;;  %v782_v32 = vrot.slane %v2086_v24, %v2715_v37 }
 0x13d   : > { %v849_v33 = vcombine.low %v798_v25, %v830_v26  ;;  %v966_v34 = vrot.slane %v952_v28, %v2718_v42  ;;  %v850_v35 = vcombine.high %v798_v25, %v830_v26  ;;  %v870_v36 = vrot.slane %v2088_v15, %v2715_v37 }
 0x13e   : > { %v799_v40 = vcombine.low %v734_v29, %v750_v30  ;;  %v831_v41 = vcombine.low %v766_v31, %v782_v32  ;;  %v886_v43 = vrot.slane %v2090_v16, %v2715_v37  ;;  %v902_v19 = vrot.slane %v2092_v17, %v2715_v37 }
 0x13f   : > { %v985_v20 = vcombine.low %v934_v27, %v966_v34  ;;  %v986_v46 = vcombine.high %v934_v27, %v966_v34  ;;  %v918_v47 = vrot.slane %v2094_v18, %v2715_v37  ;;  %v800_v48 = vcombine.high %v734_v29, %v750_v30 }
 0x140   : > { %v807_v50 = vrot.slane %v799_v40, %v2718_v42  ;;  %v839_v51 = vrot.slane %v831_v41, %v2718_v42  ;;  %v935_v52 = vcombine.low %v870_v36, %v886_v43  ;;  %v832_v53 = vcombine.high %v766_v31, %v782_v32 }
 0x141   : > { %v2325_v55 = vpack.i.bf16 %v985_v20, %v849_v33  ;;  %v2330_v56 = vpack.i.bf16 %v986_v46, %v850_v35  ;;  %v967_v57 = vcombine.low %v902_v19, %v918_v47  ;;  %v814_v58 = vrot.slane %v800_v48, %v2718_v42 }
 0x142   : > { %v852_v59 = vcombine.high %v807_v50, %v839_v51  ;;  %v943_v60 = vrot.slane %v935_v52, %v2718_v42  ;;  %v851_v61 = vcombine.low %v807_v50, %v839_v51  ;;  %v846_v62 = vrot.slane %v832_v53, %v2718_v42 }
 0x143   : > { %2326 = vrot.lane.b32.xlu1 %v2325_v55, %s2515_s5  ;;  %2331 = vrot.lane.b32.xlu0 %v2330_v56, %s2516_s7  ;;  %v975_v63 = vrot.slane %v967_v57, %v2718_v42  ;;  %v936_v0 = vcombine.high %v870_v36, %v886_v43  ;;  %v968_v1 = vcombine.high %v902_v19, %v918_v47 }
 0x144   : > { %v853_v2 = vcombine.low %v814_v58, %v846_v62  ;;  %v854_v3 = vcombine.high %v814_v58, %v846_v62 }
 0x145   : > { %v988_v4 = vcombine.high %v943_v60, %v975_v63  ;;  %v987_v5 = vcombine.low %v943_v60, %v975_v63  ;;  %v950_v6 = vrot.slane %v936_v0, %v2718_v42  ;;  %v982_v7 = vrot.slane %v968_v1, %v2718_v42 }
 0x147   : > { %v2340_v8 = vpack.i.bf16 %v988_v4, %v852_v59  ;;  %v2335_v9 = vpack.i.bf16 %v987_v5, %v851_v61  ;;  %v989_v10 = vcombine.low %v950_v6, %v982_v7  ;;  %v990_v11 = vcombine.high %v950_v6, %v982_v7 }
 0x149   : > { %2341 = vrot.lane.b32.xlu0 %v2340_v8, %s2517_s8  ;;  %2336 = vrot.lane.b32.xlu1 %v2335_v9, %s2518_s9  ;;  %v2345_v12 = vpack.i.bf16 %v989_v10, %v853_v2  ;;  %v2350_v13 = vpack.i.bf16 %v990_v11, %v854_v3 }
 0x14d   : > { %2346 = vrot.lane.b32.xlu0 %v2345_v12, %s2519_s11 }
 0x151   : > { %2351 = vrot.lane.b32.xlu0 %v2350_v13, %s2520_s21 }
 0x187   : > { %v1087_v14 = vpop.permute.xlu0 %1086 }
 0x18b   : > { %v1085_v15 = vpop.permute.xlu0 %1084  ;;  %v1091_v16 = vpop.permute.xlu1 %1090 }
 0x18f   : > { %v1089_v17 = vpop.permute.xlu1 %1088 }
 0x190   : > { %v1093_v18 = vpop.permute.xlu0 %1092 }
 0x191   : > { %v1132_v21 = vcombine.low %v1085_v15, %v1093_v18  ;;  %v1133_v22 = vcombine.high %v1085_v15, %v1093_v18 }
 0x193   : > { %v1095_v23 = vpop.permute.xlu1 %1094  ;;  %v1140_v29 = vrot.slane %v1132_v21, %v2715_v37  ;;  %v1147_v30 = vrot.slane %v1133_v22, %v2715_v37 }
 0x194   : > { %v1097_v24 = vpop.permute.xlu0 %1096  ;;  %v1268_v27 = vcombine.low %v1087_v14, %v1095_v23  ;;  %v1269_v28 = vcombine.high %v1087_v14, %v1095_v23 }
 0x195   : > { %v1148_v25 = vcombine.low %v1089_v17, %v1097_v24  ;;  %v1149_v26 = vcombine.high %v1089_v17, %v1097_v24 }
 0x196   : > { %v1276_v20 = vrot.slane %v1268_v27, %v2715_v37  ;;  %v1283_v46 = vrot.slane %v1269_v28, %v2715_v37 }
 0x197   : > { %v1156_v31 = vrot.slane %v1148_v25, %v2715_v37  ;;  %v1163_v32 = vrot.slane %v1149_v26, %v2715_v37  ;;  %v1099_v33 = vpop.permute.xlu1 %1098 }
 0x198   : > { %v1284_v34 = vcombine.low %v1091_v16, %v1099_v33  ;;  %v1285_v35 = vcombine.high %v1091_v16, %v1099_v33  ;;  %v1101_v36 = vpop.permute.xlu0 %1100 }
 0x199   : > { %v1196_v40 = vcombine.low %v1140_v29, %v1156_v31  ;;  %v1197_v41 = vcombine.high %v1140_v29, %v1156_v31  ;;  %v1212_v43 = vcombine.low %v1147_v30, %v1163_v32  ;;  %v1213_v19 = vcombine.high %v1147_v30, %v1163_v32 }
 0x19a   : > { %v1292_v47 = vrot.slane %v1284_v34, %v2715_v37  ;;  %v1299_v48 = vrot.slane %v1285_v35, %v2715_v37 }
 0x19b   : > { %v1204_v50 = vrot.slane %v1196_v40, %v2718_v42  ;;  %v1211_v51 = vrot.slane %v1197_v41, %v2718_v42  ;;  %v1220_v52 = vrot.slane %v1212_v43, %v2718_v42  ;;  %v1227_v53 = vrot.slane %v1213_v19, %v2718_v42  ;;  %v1103_v55 = vpop.permute.xlu1 %1102 }
 0x19c   : > { %v1332_v56 = vcombine.low %v1276_v20, %v1292_v47  ;;  %v1333_v57 = vcombine.high %v1276_v20, %v1292_v47  ;;  %v1348_v58 = vcombine.low %v1283_v46, %v1299_v48  ;;  %v1349_v59 = vcombine.high %v1283_v46, %v1299_v48  ;;  %v1105_v60 = vpop.permute.xlu0 %1104 }
 0x19d   : > { %v2095_v61 = vcombine.low %v1204_v50, %v1211_v51  ;;  %v2097_v62 = vcombine.high %v1204_v50, %v1211_v51  ;;  %v2099_v63 = vcombine.low %v1220_v52, %v1227_v53  ;;  %v2101_v0 = vcombine.high %v1220_v52, %v1227_v53 }
 0x19e   : > { %v1340_v1 = vrot.slane %v1332_v56, %v2718_v42  ;;  %v1347_v2 = vrot.slane %v1333_v57, %v2718_v42  ;;  %v1356_v3 = vrot.slane %v1348_v58, %v2718_v42  ;;  %v1363_v4 = vrot.slane %v1349_v59, %v2718_v42 }
 0x19f   : > { %v2866_v5 = vrot.slane %v2095_v61, %v2715_v37  ;;  %v2869_v6 = vrot.slane %v2097_v62, %v2715_v37  ;;  %v2872_v7 = vrot.slane %v2099_v63, %v2715_v37  ;;  %v2875_v8 = vrot.slane %v2101_v0, %v2715_v37  ;;  %v1107_v9 = vpop.permute.xlu1 %1106 }
 0x1a0   : > { %v2103_v10 = vcombine.low %v1340_v1, %v1347_v2  ;;  %v2105_v11 = vcombine.high %v1340_v1, %v1347_v2  ;;  %v2107_v12 = vcombine.low %v1356_v3, %v1363_v4  ;;  %v2109_v13 = vcombine.high %v1356_v3, %v1363_v4  ;;  %v1109_v14 = vpop.permute.xlu0 %1108 }
 0x1a1   : > { %v1164_v15 = vcombine.low %v1101_v36, %v1109_v14  ;;  %v1165_v16 = vcombine.high %v1101_v36, %v1109_v14  ;;  %v1468_v17 = vcombine.low %v2866_v5, %v2869_v6  ;;  %v1500_v18 = vcombine.low %v2872_v7, %v2875_v8 }
 0x1a2   : > { %v2882_v21 = vrot.slane %v2103_v10, %v2715_v37  ;;  %v2885_v22 = vrot.slane %v2105_v11, %v2715_v37  ;;  %v2888_v23 = vrot.slane %v2107_v12, %v2715_v37  ;;  %v2891_v24 = vrot.slane %v2109_v13, %v2715_v37 }
 0x1a3   : > { %v1111_v25 = vpop.permute.xlu1 %1110  ;;  %v2894_v26 = vrot.slane %v1468_v17, %v2718_v42  ;;  %v2897_v27 = vrot.slane %v1500_v18, %v2718_v42  ;;  %v1172_v33 = vrot.slane %v1164_v15, %v2715_v37  ;;  %v1179_v40 = vrot.slane %v1165_v16, %v2715_v37 }
 0x1a4   : > { %v1300_v28 = vcombine.low %v1103_v55, %v1111_v25  ;;  %v1301_v29 = vcombine.high %v1103_v55, %v1111_v25  ;;  %v1113_v30 = vpop.permute.xlu0 %1112  ;;  %v1604_v31 = vcombine.low %v2882_v21, %v2885_v22  ;;  %v1636_v32 = vcombine.low %v2888_v23, %v2891_v24 }
 0x1a5   : > { %v1180_v34 = vcombine.low %v1105_v60, %v1113_v30  ;;  %v1181_v35 = vcombine.high %v1105_v60, %v1113_v30  ;;  %v1532_v36 = vcombine.low %v2894_v26, %v2897_v27  ;;  %v1533_v41 = vcombine.high %v2894_v26, %v2897_v27 }
 0x1a6   : > { %v2910_v43 = vrot.slane %v1604_v31, %v2718_v42  ;;  %v2913_v19 = vrot.slane %v1636_v32, %v2718_v42  ;;  %v1308_v20 = vrot.slane %v1300_v28, %v2715_v37  ;;  %v1315_v46 = vrot.slane %v1301_v29, %v2715_v37 }
 0x1a7   : > { %v1188_v47 = vrot.slane %v1180_v34, %v2715_v37  ;;  %v1195_v48 = vrot.slane %v1181_v35, %v2715_v37  ;;  %v1115_v50 = vpop.permute.xlu1 %1114  ;;  %v1469_v55 = vcombine.high %v2866_v5, %v2869_v6  ;;  %v1501_v63 = vcombine.high %v2872_v7, %v2875_v8 }
 0x1a8   : > { %v1316_v51 = vcombine.low %v1107_v9, %v1115_v50  ;;  %v1317_v52 = vcombine.high %v1107_v9, %v1115_v50  ;;  %v1668_v53 = vcombine.low %v2910_v43, %v2913_v19  ;;  %v1669_v62 = vcombine.high %v2910_v43, %v2913_v19  ;;  %v2322_v16 = vpop.permute.xlu0 %2321 }
 0x1a9   : > { %v1228_v56 = vcombine.low %v1172_v33, %v1188_v47  ;;  %v1229_v57 = vcombine.high %v1172_v33, %v1188_v47  ;;  %v1244_v58 = vcombine.low %v1179_v40, %v1195_v48  ;;  %v1245_v59 = vcombine.high %v1179_v40, %v1195_v48 }
 0x1aa   : > { %v1324_v60 = vrot.slane %v1316_v51, %v2715_v37  ;;  %v1331_v61 = vrot.slane %v1317_v52, %v2715_v37  ;;  %v2324_v33 = vunpack.i.h.bf16 %v2322_v16  ;;  %v2323_v34 = vunpack.i.l.bf16 %v2322_v16 }
 0x1ab   : > { %v1236_v0 = vrot.slane %v1228_v56, %v2718_v42  ;;  %v1243_v1 = vrot.slane %v1229_v57, %v2718_v42  ;;  %v1252_v2 = vrot.slane %v1244_v58, %v2718_v42  ;;  %v1259_v3 = vrot.slane %v1245_v59, %v2718_v42 }
 0x1ac   : > { %v1364_v4 = vcombine.low %v1308_v20, %v1324_v60  ;;  %v1365_v5 = vcombine.high %v1308_v20, %v1324_v60  ;;  %v1380_v6 = vcombine.low %v1315_v46, %v1331_v61  ;;  %v1381_v9 = vcombine.high %v1315_v46, %v1331_v61 }
 0x1ad   : > { %v2096_v10 = vcombine.low %v1236_v0, %v1243_v1  ;;  %v2098_v11 = vcombine.high %v1236_v0, %v1243_v1  ;;  %v2100_v12 = vcombine.low %v1252_v2, %v1259_v3  ;;  %v2102_v13 = vcombine.high %v1252_v2, %v1259_v3 }
 0x1ae   : > { %v1372_v14 = vrot.slane %v1364_v4, %v2718_v42  ;;  %v1379_v7 = vrot.slane %v1365_v5, %v2718_v42  ;;  %v1388_v8 = vrot.slane %v1380_v6, %v2718_v42  ;;  %v1395_v15 = vrot.slane %v1381_v9, %v2718_v42 }
 0x1af   : > { %v1419_v17 = vrot.slane %v2096_v10, %v2715_v37  ;;  %v1435_v18 = vrot.slane %v2098_v11, %v2715_v37  ;;  %v2940_v25 = vrot.slane %v2100_v12, %v2715_v37  ;;  %v1467_v28 = vrot.slane %v2102_v13, %v2715_v37 }
 0x1b0   : > { %v2104_v29 = vcombine.low %v1372_v14, %v1379_v7  ;;  %v2106_v30 = vcombine.high %v1372_v14, %v1379_v7  ;;  %v2108_v31 = vcombine.low %v1388_v8, %v1395_v15  ;;  %v2110_v32 = vcombine.high %v1388_v8, %v1395_v15 }
 0x1b1   : > { %v2355_v35 = vpack.i.bf16 %v1669_v62, %v1533_v41  ;;  %v1483_v40 = vrot.slane %v1469_v55, %v2718_v42  ;;  %v1515_v50 = vrot.slane %v1501_v63, %v2718_v42  ;;  %v1605_v51 = vcombine.high %v2882_v21, %v2885_v22 }
 0x1b2   : > { %v1555_v20 = vrot.slane %v2104_v29, %v2715_v37  ;;  %v1571_v46 = vrot.slane %v2106_v30, %v2715_v37  ;;  %v1587_v47 = vrot.slane %v2108_v31, %v2715_v37  ;;  %v1603_v48 = vrot.slane %v2110_v32, %v2715_v37 }
 0x1b3   : > { %2356 = vrot.lane.b32.xlu1 %v2355_v35, %s2514_s6  ;;  %v1637_v41 = vcombine.high %v2888_v23, %v2891_v24  ;;  %v1484_v52 = vcombine.low %v1419_v17, %v1435_v18  ;;  %v1516_v55 = vcombine.low %v2940_v25, %v1467_v28  ;;  %v1619_v37 = vrot.slane %v1605_v51, %v2718_v42 }
 0x1b4   : > { %v1620_v56 = vcombine.low %v1555_v20, %v1571_v46  ;;  %v1652_v57 = vcombine.low %v1587_v47, %v1603_v48  ;;  %v1049_v21 = vsel %vm1047_vm1, %v983_v49, %v2324_v33  ;;  %v1048_v22 = vsel %vm1047_vm1, %v847_v54, %v2323_v34 }
 0x1b5   : > { %v2327_v58 = vpop.permute.xlu1 %2326  ;;  %v1651_v59 = vrot.slane %v1637_v41, %v2718_v42  ;;  %v2332_v60 = vpop.permute.xlu0 %2331  ;;  %v1534_v61 = vcombine.low %v1483_v40, %v1515_v50  ;;  %v1492_v63 = vrot.slane %v1484_v52, %v2718_v42  ;;  %v1524_v0 = vrot.slane %v1516_v55, %v2718_v42 }
 0x1b6   : > { %v2329_v23 = vunpack.i.h.bf16 %v2327_v58  ;;  %v2328_v24 = vunpack.i.l.bf16 %v2327_v58  ;;  %v1628_v2 = vrot.slane %v1620_v56, %v2718_v42  ;;  %v1660_v38 = vrot.slane %v1652_v57, %v2718_v42 }
 0x1b7   : > { %v1670_v62 = vcombine.low %v1619_v37, %v1651_v59  ;;  %v1671_v1 = vcombine.high %v1619_v37, %v1651_v59  ;;  %v1485_v39 = vcombine.high %v1419_v17, %v1435_v18  ;;  %v2334_v49 = vunpack.i.h.bf16 %v2332_v60 }
 0x1b8   : > { %v2333_v3 = vunpack.i.l.bf16 %v2332_v60  ;;  %v1535_v45 = vcombine.high %v1483_v40, %v1515_v50  ;;  %v1051_v54 = vsel %vm1050_vm2, %v1048_v22, %v2328_v24  ;;  %v1052_v4 = vsel %vm1050_vm2, %v1049_v21, %v2329_v23 }
 0x1b9   : > { %v2360_v44 = vpack.i.bf16 %v1670_v62, %v1534_v61  ;;  %v1536_v5 = vcombine.low %v1492_v63, %v1524_v0  ;;  %v1672_v6 = vcombine.low %v1628_v2, %v1660_v38  ;;  %v1673_v11 = vcombine.high %v1628_v2, %v1660_v38 }
 0x1ba   : > { %v1517_v12 = vcombine.high %v2940_v25, %v1467_v28  ;;  %v1621_v13 = vcombine.high %v1555_v20, %v1571_v46  ;;  %v1653_v14 = vcombine.high %v1587_v47, %v1603_v48  ;;  %v2365_v7 = vpack.i.bf16 %v1671_v1, %v1535_v45 }
 0x1bb   : > { %2361 = vrot.lane.b32.xlu1 %v2360_v44, %s2515_s5  ;;  %v2342_v9 = vpop.permute.xlu0 %2341  ;;  %v2337_v10 = vpop.permute.xlu1 %2336  ;;  %v1499_v16 = vrot.slane %v1485_v39, %v2718_v42  ;;  %v2370_v17 = vpack.i.bf16 %v1672_v6, %v1536_v5  ;;  %v1537_v18 = vcombine.high %v1492_v63, %v1524_v0  ;;  %v1054_v31 = vsel %vm1053_vm3, %v1051_v54, %v2333_v3 }
 0x1bc   : > { %v2339_v8 = vunpack.i.h.bf16 %v2337_v10  ;;  %v2338_v15 = vunpack.i.l.bf16 %v2337_v10  ;;  %v1531_v29 = vrot.slane %v1517_v12, %v2718_v42  ;;  %v1635_v30 = vrot.slane %v1621_v13, %v2718_v42 }
 0x1bd   : > { %v1667_v32 = vrot.slane %v1653_v14, %v2718_v42  ;;  %v1055_v25 = vsel %vm1053_vm3, %v1052_v4, %v2334_v49  ;;  %v2344_v28 = vunpack.i.h.bf16 %v2342_v9  ;;  %v2343_v33 = vunpack.i.l.bf16 %v2342_v9  ;;  %2371 = vrot.lane.b32.xlu0 %v2370_v17, %s2518_s9  ;;  %v1746_v42 = vld [vmem:[%s3114_s2] sm:$0xff]  ;;  %s233_s9 = scalar_lea.vmem [#allocation5], %s2662_s22 }
 0x1be   : > { %v2375_v35 = vpack.i.bf16 %v1673_v11, %v1537_v18  ;;  %v1058_v40 = vsel %vm1056_vm4, %v1055_v25, %v2339_v8  ;;  %v1057_v20 = vsel %vm1056_vm4, %v1054_v31, %v2338_v15  ;;  %v1538_v46 = vcombine.low %v1499_v16, %v1531_v29  ;;  %2192 = vmatprep.mubr.msk.f32.mxu1 %vm1750_vm6, %v1746_v42  ;;  %v1747_v31 = vld [vmem:[%s3114_s2 + $0x8] sm:$0xff]  ;;  %v1749_v25 = vld [vmem:[%s3114_s2 + $0x18] sm:$0xff]  ;;  %v1882_v42 = vld [vmem:[%s3115_s3 + $0x20] sm:$0xff] }
 0x1bf   : > { %2366 = vrot.lane.b32.xlu1 %v2365_v7, %s2516_s7  ;;  %v2347_v34 = vpop.permute.xlu0 %2346  ;;  %v1674_v47 = vcombine.low %v1635_v30, %v1667_v32  ;;  %v1675_v51 = vcombine.high %v1635_v30, %v1667_v32  ;;  %v1539_v55 = vcombine.high %v1499_v16, %v1531_v29  ;;  %v1060_v58 = vsel %vm1059_vm5, %v1057_v20, %v2343_v33  ;;  %v1748_v32 = vld [vmem:[%s3114_s2 + $0x10] sm:$0xff]  ;;  %v1879_v33 = vld [vmem:[%s3115_s3 + $0x8] sm:$0xff]  ;;  %v1881_v20 = vld [vmem:[%s3115_s3 + $0x18] sm:$0xff] }
 0x1c0   : > { %v2349_v48 = vunpack.i.h.bf16 %v2347_v34  ;;  %v2348_v50 = vunpack.i.l.bf16 %v2347_v34  ;;  %v1061_v37 = vsel %vm1059_vm5, %v1058_v40, %v2344_v28  ;;  %v1878_v28 = vld [vmem:[%s3115_s3] sm:$0xff]  ;;  %v1880_v34 = vld [vmem:[%s3115_s3 + $0x10] sm:$0xff] }
 0x1c1   : > { %v2380_v41 = vpack.i.bf16 %v1674_v47, %v1538_v46  ;;  %v2385_v59 = vpack.i.bf16 %v1675_v51, %v1539_v55  ;;  %v2232_v40 = vpack.c.bf16 %v1879_v33, %v1878_v28  ;;  %v2523_v46 = vmov 0.0   ;;  %v1884_v51 = vld [vmem:[%s3115_s3 + $0x30] sm:$0xff]  ;;  %v1886_v55 = vld [vmem:[%s3115_s3 + $0x40] sm:$0xff] }
 0x1c2   : > { %v1063_v21 = vsel %vm1062_vm7, %v1060_v58, %v2348_v50  ;;  %v1064_v22 = vsel %vm1062_vm7, %v1061_v37, %v2349_v48  ;;  %v2235_v47 = vpack.c.bf16 %v1881_v20, %v1880_v34  ;;  %v1883_v48 = vld [vmem:[%s3115_s3 + $0x28] sm:$0xff] }
 0x1c3   : > { %2376 = vrot.lane.b32.xlu1 %v2375_v35, %s2517_s8  ;;  %v2352_v52 = vpop.permute.xlu0 %2351  ;;  %2381 = vrot.lane.b32.xlu0 %v2380_v41, %s2519_s11  ;;  %v2521_v35 = vmov 0.0|0.0   ;;  %v2238_v50 = vpack.c.bf16 %v1883_v48, %v1882_v42  ;;  %v1885_v41 = vld [vmem:[%s3115_s3 + $0x38] sm:$0xff]  ;;  %s2116_s8 = sshll.u32 %s2498_s18, 4  ;;  %s1976_s11 = sshll.u32 %s233_s9, 4  ;;  %s3065_s11 = int_to_ptr.vmem [resolvable:$true] %s1976_s11 }
 0x1c4   : > { %v2354_v56 = vunpack.i.h.bf16 %v2352_v52  ;;  %v2353_v57 = vunpack.i.l.bf16 %v2352_v52  ;;  %v2241_v52 = vpack.c.bf16 %v1885_v41, %v1884_v51  ;;  %s3063_s25 = scalar_lea.hbm %s3116_s4, %s2116_s8  ;;  %s2424_s10 = scalar_lea.vmem %s3065_s11, 16 }
 0x1c5   : > { %p2425_p8 = scmp.ne.s32.totalorder %s3065_s11, %s2424_s10  ;;  %s2524_s18 = smov [#allocation5]  }
 0x1c6   : > { %v1066_v23 = vsel %vm1065_vm8, %v1063_v21, %v2353_v57  ;;  %v1067_v24 = vsel %vm1065_vm8, %v1064_v22, %v2354_v56  ;;  %s2428_s12 = sshll.u32 %s2524_s18, 4  ;;  %s2429_s12 = int_to_ptr.vmem [resolvable:$false] %s2428_s12 }
 0x1c7   : > { %2386 = vrot.lane.b32.xlu1 %v2385_v59, %s2520_s21  ;;  %v2223_v60 = vpack.c.bf16 %v1067_v24, %v1066_v23  ;;  %p2426_p11 = pnand %p2425_p8, %p3124_p9  ;;  %s2430_s13 = scalar_lea.vmem %s2429_s12, 32 }
 0x1c8   : > { %p2431_p6 = scmp.lt.s32.totalorder %s3065_s11, %s2429_s12  ;;  %p2432_p13 = scmp.lt.s32.totalorder %s2430_s13, %s2424_s10 }
 0x1c9   : > { %2224 = vmatprep.subr.bf16.mxu1 %v2223_v60  ;;  %p2427_p0 = pneg %p2426_p11 }
 0x1ca   : > { %2226 = vmatpush3.bf16.msra.mxu1 %v2223_v60  ;;  %p2433_p2 = por %p2432_p13, %p2431_p6 }
 0x1cc   : > { %p2434_p5 = pnand %p2433_p2, %p2427_p0 }
 0x225   : > { %v2357_v61 = vpop.permute.xlu1 %2356 }
 0x226   : > { %v2359_v62 = vunpack.i.h.bf16 %v2357_v61  ;;  %v2358_v63 = vunpack.i.l.bf16 %v2357_v61 }
 0x228   : > { %v1733_v38 = vsel %vm1047_vm1, %v1668_v53, %v2359_v62  ;;  %v1732_v39 = vsel %vm1047_vm1, %v1532_v36, %v2358_v63 }
 0x22d   : > { %v2362_v0 = vpop.permute.xlu1 %2361 }
 0x22e   : > { %v2364_v1 = vunpack.i.h.bf16 %v2362_v0  ;;  %v2363_v2 = vunpack.i.l.bf16 %v2362_v0 }
 0x22f   : > { %v2372_v3 = vpop.permute.xlu0 %2371 }
 0x230   : > { %v2374_v54 = vunpack.i.h.bf16 %v2372_v3  ;;  %v2373_v4 = vunpack.i.l.bf16 %v2372_v3  ;;  %v1734_v5 = vsel %vm1050_vm2, %v1732_v39, %v2363_v2  ;;  %v1735_v6 = vsel %vm1050_vm2, %v1733_v38, %v2364_v1 }
 0x231   : > { %v2367_v49 = vpop.permute.xlu1 %2366 }
 0x232   : > { %v2369_v44 = vunpack.i.h.bf16 %v2367_v49  ;;  %v2368_v45 = vunpack.i.l.bf16 %v2367_v49 }
 0x234   : > { %v1736_v9 = vsel %vm1053_vm3, %v1734_v5, %v2368_v45  ;;  %v1737_v43 = vsel %vm1053_vm3, %v1735_v6, %v2369_v44 }
 0x235   : > { %v1738_v19 = vsel %vm1056_vm4, %v1736_v9, %v2373_v4  ;;  %v1739_v26 = vsel %vm1056_vm4, %v1737_v43, %v2374_v54  ;;  %v2377_v27 = vpop.permute.xlu1 %2376  ;;  %v2382_v10 = vpop.permute.xlu0 %2381 }
 0x236   : > { %v2379_v36 = vunpack.i.h.bf16 %v2377_v27  ;;  %v2378_v53 = vunpack.i.l.bf16 %v2377_v27  ;;  %v2384_v11 = vunpack.i.h.bf16 %v2382_v10  ;;  %v2383_v12 = vunpack.i.l.bf16 %v2382_v10 }
 0x238   : > { %v1740_v13 = vsel %vm1059_vm5, %v1738_v19, %v2378_v53  ;;  %v1741_v14 = vsel %vm1059_vm5, %v1739_v26, %v2379_v36 }
 0x239   : > { %v1742_v7 = vsel %vm1062_vm7, %v1740_v13, %v2383_v12  ;;  %v1743_v8 = vsel %vm1062_vm7, %v1741_v14, %v2384_v11  ;;  %v2387_v15 = vpop.permute.xlu1 %2386 }
 0x23a   : > { %v2389_v16 = vunpack.i.h.bf16 %v2387_v15  ;;  %v2388_v17 = vunpack.i.l.bf16 %v2387_v15 }
 0x23c   : > { %v1744_v18 = vsel %vm1065_vm8, %v1742_v7, %v2388_v17  ;;  %v1745_v29 = vsel %vm1065_vm8, %v1743_v8, %v2389_v16 }
 0x23d   : > { %v2227_v30 = vpack.c.bf16 %v1745_v29, %v1744_v18 }
 0x23f   : > { %2228 = vmatprep.subr.bf16.mxu1 %v2227_v30 }
 0x240   : > { %2230 = vmatpush3.bf16.msra.mxu1 %v2227_v30 }
 0x241   : > { %2231 = vmatprep.subr.bf16.mxu1 %v2521_v35 }
 0x243   : > { %2193 = vmatmul.mubr.msk.f32.vlgmr.msra.gmra.mrb[0].mxu1 %vm1750_vm6, %v1747_v31 }
 0x244   : > { %2195 = vmatprep.mubr.msk.f32.mxu1 %vm1750_vm6, %v1748_v32  ;;  %2233 = vmatpush3.bf16.msra.mxu1 %v2232_v40 }
 0x245   : > { %2234 = vmatprep.subr.bf16.mxu1 %v2521_v35 }
 0x247   : > { %2196 = vmatmul.mubr.msk.f32.gmra.mrb[2].mxu1 %vm1750_vm6, %v1749_v25 }
 0x248   : > { %2216 = vmatprep.mubr.msk.f32.mxu1 %vm2522_vm9, %v2523_v46  ;;  %2236 = vmatpush3.bf16.msra.mxu1 %v2235_v47 }
 0x249   : > { %2237 = vmatprep.subr.bf16.mxu1 %v2521_v35 }
 0x24c   : > { %2239 = vmatpush3.bf16.msra.mxu1 %v2238_v50 }
 0x24d   : > { %2240 = vmatprep.subr.bf16.mxu1 %v2521_v35 }
 0x250   : > { %2242 = vmatpush3.bf16.msra.mxu1 %v2241_v52 }
 0x251   : > { %2214 = vmatprep.subr.mxu1 %v2523_v46 }
 0x254   : > { %2215 = vmatpush3.msra.mxu1 %v1886_v55 }
 0x316   : > { %v2194_v56 = vpop.f32.mrb[0].mxu1 }
 0x317   : > { %v1829_v57 = vpop.f32.mrb[1].mxu1  ;;  %v1849_v37 = vmul.f32 %v2194_v56, %v2194_v56 }
 0x318   : > { %v1848_v22 = vmul.f32 %v1829_v57, %v1829_v57 }
 0x31a   : > { %v2197_v58 = vpop.f32.mrb[2].mxu1 }
 0x31b   : > { %v1851_v59 = vmul.f32 %v2197_v58, %v2197_v58  ;;  %v1839_v21 = vpop.f32.mrb[3].mxu1 }
 0x31c   : > { %v1850_v23 = vmul.f32 %v1839_v21, %v1839_v21 }
 0x31d   : > { %v1853_v24 = vadd.f32 %v1851_v59, %v1849_v37 }
 0x31e   : > { %v1852_v60 = vadd.f32 %v1850_v23, %v1848_v22 }
 0x31f   : > { %2390 = vrsqrt.f32 %v1853_v24  ;;  %vm1863_vm10 = vcmp.eq.f32.partialorder %v1853_v24, inf  ;;  %v1866_v1 = vand.u32 2147483648, %v1853_v24  ;;  %vm1865_vm13 = vcmp.eq.f32.partialorder %v1853_v24, 0.0 }
 0x320   : > { %2392 = vrsqrt.f32 %v1852_v60  ;;  %vm1856_vm12 = vcmp.eq.f32.partialorder %v1852_v60, inf  ;;  %v1859_v2 = vand.u32 2147483648, %v1852_v60  ;;  %vm1858_vm14 = vcmp.eq.f32.partialorder %v1852_v60, 0.0 }
 0x329   : > { %v2391_v61 = vpop.eup %2390 }
 0x32a   : > { %v2393_v62 = vpop.eup %2392  ;;  %v1862_v63 = vmul.f32 %v2391_v61, %v1853_v24 }
 0x32b   : > { %v1855_v0 = vmul.f32 %v2393_v62, %v1852_v60 }
 0x32c   : > { %v1864_v38 = vsel %vm1863_vm10, %v1853_v24, %v1862_v63 }
 0x32d   : > { %v1857_v39 = vsel %vm1856_vm12, %v1852_v60, %v1855_v0  ;;  %v1867_v49 = vsel %vm1865_vm13, %v1866_v1, %v1864_v38 }
 0x32e   : > { %v1860_v3 = vsel %vm1858_vm14, %v1859_v2, %v1857_v39  ;;  %v1870_v44 = vsel %vm1868_vm11, %v1867_v49, 0.0 }
 0x32f   : > { %v1869_v45 = vsel %vm1868_vm11, %v1860_v3, 0.0 }
 0x330   : > { %v1871_v54 = vadd.f32 %v1870_v44, %v1869_v45 }
 0x332   : > { %v1872_v4 = vrot.slane %v1871_v54, 4 }
 0x334   : > { %v1873_v5 = vadd.f32 %v1872_v4, %v1871_v54 }
 0x336   : > { %v1874_v6 = vrot.slane %v1873_v5, 2 }
 0x338   : > { %v1875_v9 = vadd.f32 %v1874_v6, %v1873_v5 }
 0x33a   : > { %v1876_v43 = vrot.slane %v1875_v9, 1 }
 0x33c   : > { %v1877_v19 = vadd.f32 %v1876_v43, %v1875_v9 }
 0x33e   : > { %2217 = vmatmul.mubr.msk.f32.vlgmr.msra.gmra.mrb[4].mxu1 %vm1868_vm11, %v1877_v19 }
 0x411   : > { %v1956_v26 = vpop.f32.mrb[4].mxu1 }
 0x412   : > { %1961 = vst.msk [vmem:[%s233_s9] sm:$0x1] %vm1960_vm15, %v1956_v26  ;;  %v2218_v27 = vpop.f32.mrb[5].mxu1 }
 0x413   : > { %2437 = shalt.err (!%p2434_p5)
}
 0x414   : > { %s2438_s22 = scalar_lea.hbm %s3063_s25, 16  ;;  %s2442_s6 = scalar_lea.hbm %s3116_s4, 32 }
 0x415   : > { %p2439_p4 = scmp.ne.s32.totalorder %s3063_s25, %s2438_s22  ;;  %p2443_p12 = scmp.lt.u32.totalorder %s3063_s25, %s3116_s4 }
 0x416   : > { %p2444_p1 = scmp.lt.u32.totalorder %s2442_s6, %s2438_s22  ;;  %p2446_p8 = scmp.lt.u32.totalorder %s2438_s22, %s3063_s25 }
 0x417   : > { %p2440_p7 = pnand %p2439_p4, %p3124_p9 }
 0x418   : > { %p2445_p3 = por %p2444_p1, %p2443_p12 }
 0x419   : > { %p2441_p10 = pneg %p2440_p7 }
 0x41a   : > { %p2447_p11 = por %p2446_p8, %p2445_p3 }
 0x41c   : > { %p2448_p0 = pnand %p2447_p11, %p2441_p10 }
 0x41e   : > { %2451 = shalt.err (!%p2448_p0)
}
 0x41f   : > { %2245 = dma.vmem_to_hbm [thread:$0]  (%p3124_p9), %s3065_s11, 16, %s3063_s25, %s1963_s26  }
 0x420 PF: > { %s1988_s8 = sand.u32 1, %s2486_s15   ;;  %p3125_p6 = scmp.ne.s32.totalorder %s3121_s30, 0 }
 0x421   : > { %p3126_p13 = scmp.ge.s32.totalorder %s2506_s20, 2  ;;  %s1989_s9 = scalar_lea.sflag [#allocation4], %s1988_s8 }
 0x423   : > { %p2252_p2 = pnand %p3126_p13, %p3125_p6 }
 0x425   : > { %2481 = dma.done.wait (!%p2252_p2), %s1989_s9, 16  }
 0x426   : > { %2483 = vsyncadd (!%p2252_p2), %s1989_s9, 4294967280  ;;  %s20_s20 = sadd.s32 1, %s2506_s20   ;;  %s3127_s15 = smov %s2490_s16 }
 0x427   : > { %p17_p5 = scmp.ge.s32.totalorder %s20_s20, 4   ;;  %s3128_s16 = smov %s2494_s17 }
 0x428   : > { %s3129_s17 = smov %s2606_s29  ;;  %s3130_s18 = smov %s2502_s19 }
 0x429   : > { %s3131_s19 = smov %s3133_s23  ;;  %19 = sbr.rel (!%p17_p5) target bundleno = 6 (0x6), region = 81 }
 0x430   :  { %1993 = vsyncpa [#allocation3], 1 }
 0x431   :  { %1995 = vsyncpa [#allocation3 + $0x1], 1 }
 0x432   :  { %1996 = vsyncpa [#allocation4], 1 }
 0x433   :  { %1998 = vsyncpa [#allocation4 + $0x1], 1 }

</bundles_post_ra>
